<compile_context>
chip_gen: v6e
topology: v6e:2x2x1
jax: 0.10.0
libtpu: 0.0.40
codegen_flags: <defaults>
</compile_context>

<pallas_src>
import math

import jax
import jax.numpy as jnp
import numpy as np
from jax.experimental import pallas as pl
from jax.experimental.pallas import tpu as pltpu  # noqa: F401  (no TPU-specific params needed at this size)

# ---- small synthetic config (consistent with the module) --------------------
BATCH = 2
SEQ = 16
EMBED = 64
NUM_HEADS = 4
HEAD_DIM = EMBED // NUM_HEADS
SCALING = float(HEAD_DIM) ** -0.5


# ---- Pallas kernel: full MHA forward, whole batch in one invocation ---------
def mha_kernel(x_ref, wqkv_ref, wout_ref, b_ref, out_ref, wts_ref):
    B, T, E, H, hd = BATCH, SEQ, EMBED, NUM_HEADS, HEAD_DIM

    # --- fused QKV projection: one (B*T, E) @ (E, 3E) MXU matmul,
    #     bf16 operands, f32 accumulation. SCALING pre-folded into Q columns.
    x = x_ref[...].reshape(B * T, E).astype(jnp.bfloat16)          # leading-dim merge: free
    qkv = jnp.dot(x, wqkv_ref[...], preferred_element_type=jnp.float32)   # (B*T, 3E) f32

    # biases packed as rows of a (4, E) block -> free sublane slices
    q = qkv[:, :E] + b_ref[0:1, :]               # already scaled (fold done host-side)
    k = qkv[:, E:2 * E] + b_ref[1:2, :]
    v = qkv[:, 2 * E:] + b_ref[2:3, :]

    # --- head split: one batched minor transpose per tensor; the reshapes are
    #     tile-aligned layout no-ops.  (B*T, E) -> (B*H, hd, T)
    def heads_T(z):
        return z.reshape(B, T, E).transpose(0, 2, 1).reshape(B * H, hd, T)

    kt = heads_T(k).astype(jnp.bfloat16)                      # (B*H, hd, T)
    vt = heads_T(v).astype(jnp.bfloat16)                      # (B*H, hd, T)
    qh = heads_T(q).transpose(0, 2, 1).astype(jnp.bfloat16)   # (B*H, T, hd)

    # --- scores: canonical batched matmul  'bqd,bdk->bqk'  -> (B*H, T, T) f32
    scores = jax.lax.dot_general(
        qh, kt, (((2,), (1,)), ((0,), (0,))),
        preferred_element_type=jnp.float32)

    # --- stable softmax, all f32; reciprocal uses the otherwise-idle EUP slot.
    #     (approx=True -> rows sum to 1 only to ~1e-3; well inside test tolerance)
    m = jnp.max(scores, axis=-1, keepdims=True)
    e = jnp.exp(scores - m)
    probs = e * pl.reciprocal(jnp.sum(e, axis=-1, keepdims=True), approx=True)
    wts_ref[...] = probs                                      # (B*H, T, T), module-native shape

    # --- PV, produced directly in head-major (transposed) layout:
    #     ctxT[bh, d, q] = sum_k v[bh, k, d] * probs[bh, q, k]   ('bdk,bqk->bdq')
    ctxT = jax.lax.dot_general(
        vt, probs.astype(jnp.bfloat16), (((2,), (2,)), ((0,), (0,))),
        preferred_element_type=jnp.float32)                   # (B*H, hd, T) f32

    # --- head re-concat (one batched transpose) + single K=E output matmul
    ctx = (ctxT.reshape(B, E, T)          # merge heads into the embed dim: layout no-op
                .transpose(0, 2, 1)       # (B, T, E)
                .reshape(B * T, E)        # leading-dim merge: free
                .astype(jnp.bfloat16))
    y = jnp.dot(ctx, wout_ref[...], preferred_element_type=jnp.float32) + b_ref[3:4, :]
    out_ref[...] = y.reshape(B, T, E)


# ---- wrapper -----------------------------------------------------------------
def multihead_attention(query, w_qkv_packed, w_out_packed, b_packed):
    """query: (B,T,E) f32; w_qkv_packed: (E,3E) bf16 (Q cols pre-scaled);
    w_out_packed: (E,E) bf16; b_packed: (4,E) f32 rows [b_q*scaling, b_k, b_v, b_out]."""
    B, T, E = query.shape
    out, wts = pl.pallas_call(
        mha_kernel,
        out_shape=(
            jax.ShapeDtypeStruct((B, T, E), jnp.float32),
            jax.ShapeDtypeStruct((B * NUM_HEADS, T, T), jnp.float32),
        ),
    )(query, w_qkv_packed, w_out_packed, b_packed)
    # module returns weights as (bsz * num_heads, tgt_len, src_len) -> already that shape
    return out, wts


# ---- pure-JAX f32 reference (mirrors the PyTorch forward exactly) ------------
def reference(query, w_qkv, b_qkv, w_out, b_out):
    B, T, E = query.shape
    H, hd = NUM_HEADS, HEAD_DIM
    qkv = query @ w_qkv + b_qkv
    q, k, v = jnp.split(qkv, 3, axis=-1)
    q = q * SCALING

    def sh(z):                                     # (B,T,E) -> (B*H, T, hd)
        return z.reshape(B, T, H, hd).transpose(0, 2, 1, 3).reshape(B * H, T, hd)

    qh, kh, vh = sh(q), sh(k), sh(v)
    w = jax.nn.softmax(jnp.einsum("bqd,bkd->bqk", qh, kh), axis=-1)
    ctx = jnp.einsum("bqk,bkd->bqd", w, vh)
    ctx = ctx.reshape(B, H, T, hd).transpose(0, 2, 1, 3).reshape(B, T, E)
    return ctx @ w_out + b_out, w


# ---- main ---------------------------------------------------------------------
if __name__ == "__main__":
    key = jax.random.PRNGKey(0)
    kq, kw1, kb1, kw2, kb2 = jax.random.split(key, 5)

    bound = 1.0 / math.sqrt(EMBED)                 # nn.Linear default init bound
    # project_qkv weight stored transposed as (in=E, out=3E); project_out as (E, E)
    w_qkv = jax.random.uniform(kw1, (EMBED, 3 * EMBED), jnp.float32, -bound, bound)
    b_qkv = jax.random.uniform(kb1, (3 * EMBED,), jnp.float32, -bound, bound)
    w_out = jax.random.uniform(kw2, (EMBED, EMBED), jnp.float32, -bound, bound)
    b_out = jax.random.uniform(kb2, (EMBED,), jnp.float32, -bound, bound)

    query = jax.random.normal(kq, (BATCH, SEQ, EMBED), jnp.float32)

    # ---- one-time host-side constant transforms (weight folds, not per-call ops) ----
    # fold the 1/sqrt(head_dim) scaling into the Q slice of the fused projection
    scale_cols = jnp.concatenate([
        jnp.full((EMBED,), SCALING, jnp.float32),
        jnp.ones((2 * EMBED,), jnp.float32)])
    w_qkv_packed = (w_qkv * scale_cols[None, :]).astype(jnp.bfloat16)      # (E, 3E) bf16
    w_out_packed = w_out.astype(jnp.bfloat16)                              # (E, E)  bf16
    b_scaled = b_qkv * scale_cols
    b_packed = jnp.stack([b_scaled[:EMBED],                                # (4, E) f32 rows
                          b_scaled[EMBED:2 * EMBED],
                          b_scaled[2 * EMBED:],
                          b_out])

    out, wts = multihead_attention(query, w_qkv_packed, w_out_packed, b_packed)
    out = jax.block_until_ready(out)
    wts = jax.block_until_ready(wts)

    ref_out, ref_w = reference(query, w_qkv, b_qkv, w_out, b_out)
    ref_out = jax.block_until_ready(ref_out)

    np.testing.assert_allclose(np.asarray(out), np.asarray(ref_out), rtol=2e-2, atol=2e-2)
    np.testing.assert_allclose(np.asarray(wts), np.asarray(ref_w), rtol=2e-2, atol=2e-2)

    print("KERNEL_OK")
</pallas_src>

<mosaic_0001>
module attributes {stable_mosaic.version = 11 : i64} {
  func.func @mha_kernel(%arg0: memref<2x16x64xf32, #tpu.memory_space<vmem>>, %arg1: memref<64x192xbf16, #tpu.memory_space<vmem>>, %arg2: memref<64x64xbf16, #tpu.memory_space<vmem>>, %arg3: memref<4x64xf32, #tpu.memory_space<vmem>>, %arg4: memref<2x16x64xf32, #tpu.memory_space<vmem>>, %arg5: memref<8x16x16xf32, #tpu.memory_space<vmem>>) attributes {dimension_semantics = [], scalar_prefetch = 0 : i64, scratch_operands = 0 : i64, tpu.core_type = #tpu.core_type<tc>} {
    %c0 = arith.constant 0 : index
    %c0_0 = arith.constant 0 : index
    %c0_1 = arith.constant 0 : index
    %0 = vector.load %arg0[%c0, %c0_0, %c0_1] : memref<2x16x64xf32, #tpu.memory_space<vmem>>, vector<2x16x64xf32>
    %1 = vector.shape_cast %0 : vector<2x16x64xf32> to vector<32x64xf32>
    %2 = arith.truncf %1 : vector<32x64xf32> to vector<32x64xbf16>
    %c0_2 = arith.constant 0 : index
    %c0_3 = arith.constant 0 : index
    %3 = vector.load %arg1[%c0_2, %c0_3] : memref<64x192xbf16, #tpu.memory_space<vmem>>, vector<64x192xbf16>
    %cst = arith.constant dense<0.000000e+00> : vector<32x192xf32>
    %4 = tpu.matmul %2, %3, %cst {dimension_numbers = #tpu.dot_dimension_numbers<[1], [0], [0], [1], [0, 0, 1, 1], [], []>} : vector<32x64xbf16>, vector<64x192xbf16>, vector<32x192xf32> -> vector<32x192xf32>
    %5 = vector.extract_strided_slice %4 {offsets = [0, 0], sizes = [32, 64], strides = [1, 1]} : vector<32x192xf32> to vector<32x64xf32>
    %c0_4 = arith.constant 0 : index
    %c0_5 = arith.constant 0 : index
    %6 = vector.load %arg3[%c0_4, %c0_5] : memref<4x64xf32, #tpu.memory_space<vmem>>, vector<1x64xf32>
    %7 = vector.broadcast %6 : vector<1x64xf32> to vector<32x64xf32>
    %8 = arith.addf %5, %7 : vector<32x64xf32>
    %9 = vector.extract_strided_slice %4 {offsets = [0, 64], sizes = [32, 64], strides = [1, 1]} : vector<32x192xf32> to vector<32x64xf32>
    %c1 = arith.constant 1 : index
    %c0_6 = arith.constant 0 : index
    %10 = vector.load %arg3[%c1, %c0_6] : memref<4x64xf32, #tpu.memory_space<vmem>>, vector<1x64xf32>
    %11 = vector.broadcast %10 : vector<1x64xf32> to vector<32x64xf32>
    %12 = arith.addf %9, %11 : vector<32x64xf32>
    %13 = vector.extract_strided_slice %4 {offsets = [0, 128], sizes = [32, 64], strides = [1, 1]} : vector<32x192xf32> to vector<32x64xf32>
    %c2 = arith.constant 2 : index
    %c0_7 = arith.constant 0 : index
    %14 = vector.load %arg3[%c2, %c0_7] : memref<4x64xf32, #tpu.memory_space<vmem>>, vector<1x64xf32>
    %15 = vector.broadcast %14 : vector<1x64xf32> to vector<32x64xf32>
    %16 = arith.addf %13, %15 : vector<32x64xf32>
    %17 = vector.shape_cast %12 : vector<32x64xf32> to vector<2x16x64xf32>
    %18 = tpu.transpose %17, [0, 2, 1] : vector<2x16x64xf32> -> vector<2x64x16xf32>
    %19 = vector.shape_cast %18 : vector<2x64x16xf32> to vector<8x16x16xf32>
    %20 = arith.truncf %19 : vector<8x16x16xf32> to vector<8x16x16xbf16>
    %21 = vector.shape_cast %16 : vector<32x64xf32> to vector<2x16x64xf32>
    %22 = tpu.transpose %21, [0, 2, 1] : vector<2x16x64xf32> -> vector<2x64x16xf32>
    %23 = vector.shape_cast %22 : vector<2x64x16xf32> to vector<8x16x16xf32>
    %24 = arith.truncf %23 : vector<8x16x16xf32> to vector<8x16x16xbf16>
    %25 = vector.shape_cast %8 : vector<32x64xf32> to vector<2x16x64xf32>
    %26 = tpu.transpose %25, [0, 2, 1] : vector<2x16x64xf32> -> vector<2x64x16xf32>
    %27 = vector.shape_cast %26 : vector<2x64x16xf32> to vector<8x16x16xf32>
    %28 = tpu.transpose %27, [0, 2, 1] : vector<8x16x16xf32> -> vector<8x16x16xf32>
    %29 = arith.truncf %28 : vector<8x16x16xf32> to vector<8x16x16xbf16>
    %cst_8 = arith.constant dense<0.000000e+00> : vector<8x16x16xf32>
    %30 = tpu.matmul %29, %20, %cst_8 {dimension_numbers = #tpu.dot_dimension_numbers<[2], [1], [1], [2], [0, 0, 0, 1, 1, 2], [0], [0]>} : vector<8x16x16xbf16>, vector<8x16x16xbf16>, vector<8x16x16xf32> -> vector<8x16x16xf32>
    %cst_9 = arith.constant dense<0xFF800000> : vector<8x16xf32>
    %31 = vector.multi_reduction <maximumf>, %30, %cst_9 [2] : vector<8x16x16xf32> to vector<8x16xf32>
    %32 = vector.shape_cast %31 : vector<8x16xf32> to vector<8x16x1xf32>
    %33 = vector.broadcast %32 : vector<8x16x1xf32> to vector<8x16x16xf32>
    %34 = arith.subf %30, %33 : vector<8x16x16xf32>
    %35 = math.exp %34 : vector<8x16x16xf32>
    %cst_10 = arith.constant dense<0.000000e+00> : vector<8x16xf32>
    %36 = vector.multi_reduction <add>, %35, %cst_10 [2] : vector<8x16x16xf32> to vector<8x16xf32>
    %37 = vector.shape_cast %36 : vector<8x16xf32> to vector<8x16x1xf32>
    %38 = tpu.reciprocal %37 {approx = true} : vector<8x16x1xf32> -> vector<8x16x1xf32>
    %39 = vector.broadcast %38 : vector<8x16x1xf32> to vector<8x16x16xf32>
    %40 = arith.mulf %35, %39 : vector<8x16x16xf32>
    %c0_11 = arith.constant 0 : index
    %c0_12 = arith.constant 0 : index
    %c0_13 = arith.constant 0 : index
    %41 = vector.load %arg5[%c0_11, %c0_12, %c0_13] : memref<8x16x16xf32, #tpu.memory_space<vmem>>, vector<8x16x16xf32>
    tpu.vector_store %arg5[%c0_11, %c0_12, %c0_13], %40 {strides = array<i32>} : memref<8x16x16xf32, #tpu.memory_space<vmem>>, vector<8x16x16xf32>,
    %42 = arith.truncf %40 : vector<8x16x16xf32> to vector<8x16x16xbf16>
    %cst_14 = arith.constant dense<0.000000e+00> : vector<8x16x16xf32>
    %43 = tpu.matmul %24, %42, %cst_14 {dimension_numbers = #tpu.dot_dimension_numbers<[2], [2], [1], [1], [0, 0, 0, 1, 1, 1], [0], [0]>} : vector<8x16x16xbf16>, vector<8x16x16xbf16>, vector<8x16x16xf32> -> vector<8x16x16xf32>
    %44 = vector.shape_cast %43 : vector<8x16x16xf32> to vector<2x64x16xf32>
    %45 = tpu.transpose %44, [0, 2, 1] : vector<2x64x16xf32> -> vector<2x16x64xf32>
    %46 = vector.shape_cast %45 : vector<2x16x64xf32> to vector<32x64xf32>
    %47 = arith.truncf %46 : vector<32x64xf32> to vector<32x64xbf16>
    %c0_15 = arith.constant 0 : index
    %c0_16 = arith.constant 0 : index
    %48 = vector.load %arg2[%c0_15, %c0_16] : memref<64x64xbf16, #tpu.memory_space<vmem>>, vector<64x64xbf16>
    %cst_17 = arith.constant dense<0.000000e+00> : vector<32x64xf32>
    %49 = tpu.matmul %47, %48, %cst_17 {dimension_numbers = #tpu.dot_dimension_numbers<[1], [0], [0], [1], [0, 0, 1, 1], [], []>} : vector<32x64xbf16>, vector<64x64xbf16>, vector<32x64xf32> -> vector<32x64xf32>
    %c3 = arith.constant 3 : index
    %c0_18 = arith.constant 0 : index
    %50 = vector.load %arg3[%c3, %c0_18] : memref<4x64xf32, #tpu.memory_space<vmem>>, vector<1x64xf32>
    %51 = vector.broadcast %50 : vector<1x64xf32> to vector<32x64xf32>
    %52 = arith.addf %49, %51 : vector<32x64xf32>
    %53 = vector.shape_cast %52 : vector<32x64xf32> to vector<2x16x64xf32>
    %c0_19 = arith.constant 0 : index
    %c0_20 = arith.constant 0 : index
    %c0_21 = arith.constant 0 : index
    %54 = vector.load %arg4[%c0_19, %c0_20, %c0_21] : memref<2x16x64xf32, #tpu.memory_space<vmem>>, vector<2x16x64xf32>
    tpu.vector_store %arg4[%c0_19, %c0_20, %c0_21], %53 {strides = array<i32>} : memref<2x16x64xf32, #tpu.memory_space<vmem>>, vector<2x16x64xf32>,
    return
  }
}

</mosaic_0001>

<bundles_post_ra>
// kernel: tpu_custom_call.1
= control target key start
LH: loop header
LB: loop body
LE: loop exit
PB: predicated region body
PF: predicated region fallthrough
CT: control target
= control target key end

     0   :  { %11 = vsyncpa [#allocation3], 0  ;;  %s2669_s0 = inlined_call_operand.hbm [shape: f32[2,16,64], index: 0, kind: input, shape index: {}]   ;;  %s2670_s1 = inlined_call_operand.hbm [shape: bf16[64,192], index: 1, kind: input, shape index: {}]   ;;  %s2671_s2 = inlined_call_operand.hbm [shape: bf16[64,64], index: 2, kind: input, shape index: {}]   ;;  %s2672_s3 = inlined_call_operand.vmem [shape: f32[4,64], index: 3, kind: input, shape index: {}]   ;;  %s2673_s4 = inlined_call_operand.hbm [shape: f32[2,16,64], index: 4, kind: output, shape index: {0}]   ;;  %s2674_s5 = inlined_call_operand.hbm [shape: f32[8,16,16], index: 5, kind: output, shape index: {1}]  }
   0x1   :  { %12 = vsyncpa [#allocation6], 0 }
   0x2   :  { %13 = vsyncpa [#allocation4], 0 }
   0x3   :  { %14 = vsyncpa [#allocation10], 0  ;;  %s2311_s18 = smov [#allocation5]   ;;  %s2312_s20 = smov [#allocation2]  }
   0x4   :  { %s32_s19 = sshll.u32 %s2311_s18, 4  ;;  %s20_s21 = sshll.u32 %s2312_s20, 4  ;;  %s33_s19 = int_to_ptr.vmem [resolvable:$true] %s32_s19  ;;  %s21_s21 = int_to_ptr.vmem [resolvable:$true] %s20_s21 }
   0x5   :  { %s2211_s22 = scalar_lea.vmem %s33_s19, 1024  ;;  %p2216_p1 = scmp.lt.s32.totalorder %s33_s19, %s33_s19 }
   0x6   :  { %p2212_p0 = scmp.ne.s32.totalorder %s33_s19, %s2211_s22  ;;  %p2217_p2 = scmp.lt.s32.totalorder %s2211_s22, %s2211_s22 }
   0x8   :  { %p2218_p3 = por %p2217_p2, %p2216_p1 }
   0xa   :  { %p2219_p4 = pnand %p2218_p3, %p2212_p0 }
   0xc   :  { %2222 = shalt.err (!%p2219_p4)
}
   0xd   :  { %s2313_s23 = smov 128   ;;  %s2314_s24 = smov 8  }
   0xe   :  { %38 = dma.hbm_to_vmem [thread:$0]  %s2670_s1, 1024, %s33_s19, [#allocation6], %s2313_s23, %s2313_s23, %s2314_s24  }
   0xf   :  { %s2231_s27 = scalar_lea.vmem %s21_s21, 512  ;;  %p2236_p6 = scmp.lt.s32.totalorder %s21_s21, %s21_s21 }
  0x10   :  { %p2232_p5 = scmp.ne.s32.totalorder %s21_s21, %s2231_s27  ;;  %p2237_p7 = scmp.lt.s32.totalorder %s2231_s27, %s2231_s27 }
  0x12   :  { %p2238_p8 = por %p2237_p7, %p2236_p6 }
  0x14   :  { %p2239_p9 = pnand %p2238_p8, %p2232_p5 }
  0x16   :  { %2242 = shalt.err (!%p2239_p9)
}
  0x17   :  { %26 = dma.hbm_to_vmem [thread:$0]  %s2669_s0, 512, %s21_s21, [#allocation3], %s2313_s23, %s2313_s23, %s2314_s24  }
  0x18   :  { %s2315_s30 = smov [#allocation7]  }
  0x19   :  { %s44_s6 = sshll.u32 %s2315_s30, 4  ;;  %s45_s6 = int_to_ptr.vmem [resolvable:$true] %s44_s6 }
  0x1a   :  { %s2251_s7 = scalar_lea.vmem %s45_s6, 512  ;;  %p2256_p11 = scmp.lt.s32.totalorder %s45_s6, %s45_s6 }
  0x1b   :  { %p2252_p10 = scmp.ne.s32.totalorder %s45_s6, %s2251_s7  ;;  %p2257_p12 = scmp.lt.s32.totalorder %s2251_s7, %s2251_s7 }
  0x1d   :  { %p2258_p13 = por %p2257_p12, %p2256_p11 }
  0x1f   :  { %p2259_p0 = pnand %p2258_p13, %p2252_p10 }
  0x21   :  { %2262 = shalt.err (!%p2259_p0)
}
  0x22   :  { %s2316_s1 = smov 64   ;;  %s2317_s8 = smov 4  }
  0x23   :  { %50 = dma.hbm_to_vmem [thread:$0]  %s2671_s2, 512, %s45_s6, [#allocation6], %s2316_s1, %s2316_s1, %s2317_s8  }
  0x24   :  { %2303 = dma.done.wait [#allocation3], 512  }
  0x25   :  { %2304 = vsyncadd [#allocation3], 4294966784 }
  0x26   :  { %2305 = dma.done.wait [#allocation6], 1536  }
  0x27   :  { %2306 = vsyncadd [#allocation6], 4294965760  ;;  %v2318_v0 = vmov 0   ;;  %v2123_v1 = vld [vmem:[#allocation5 + $0x34] ss:$8 sps:$4 sm:$0xff]   ;;  %v63_v10 = vld [vmem:[#allocation2] sm:$0xff] }
  0x28   :  { %156 = vmatprep.mubr.bf16.mxu0 %v2318_v0  ;;  %v2125_v2 = vld [vmem:[#allocation5 + $0x30] ss:$8 sps:$4 sm:$0xff]   ;;  %132 = vmatprep.subr.bf16.mxu0 %v2123_v1  ;;  %v2126_v3 = vld [vmem:[#allocation5 + $0x24] ss:$8 sps:$4 sm:$0xff]   ;;  %v2128_v4 = vld [vmem:[#allocation5 + $0x20] ss:$8 sps:$4 sm:$0xff]  }
  0x29   :  { %133 = vmatpush1.bf16.msra.mxu0 %v2125_v2  ;;  %v2129_v5 = vld [vmem:[#allocation5 + $0x14] ss:$8 sps:$4 sm:$0xff]   ;;  %v2131_v6 = vld [vmem:[#allocation5 + $0x10] ss:$8 sps:$4 sm:$0xff]   ;;  %v2132_v7 = vld [vmem:[#allocation5 + $0x4] ss:$8 sps:$4 sm:$0xff]  }
  0x2a   :  { %134 = vmatprep.subr.bf16.mxu0 %v2126_v3  ;;  %v1832_v8 = vld [vmem:[%s2672_s3 + $0x1] ss:$0 sm:$0xff]  ;;  %v64_v11 = vld [vmem:[#allocation2 + $0x8] sm:$0xff]  ;;  %vm117_vm0 = vcmask 523264   ;;  %v65_v13 = vld [vmem:[#allocation2 + $0x10] sm:$0xff]  ;;  %v2319_v38 = vmov 0.0  }
  0x2b   :  { %192 = vrot.lane.b32.xlu0 %v1832_v8, %s2316_s1  ;;  %v2134_v9 = vld [vmem:[#allocation5] ss:$8 sps:$4 sm:$0xff]   ;;  %v67_v12 = vpack.c.bf16 %v64_v11, %v63_v10  ;;  %v66_v14 = vld [vmem:[#allocation2 + $0x18] sm:$0xff]  ;;  %1895 = vmatprep.subr.bf16.mxu1 %v2319_v38  ;;  %vm2320_vm1 = vmmov 0   ;;  %vm696_vm2 = vcmask 130048   ;;  %s2321_s15 = smov [#allocation9]  }
  0x2c   :  { %v68_v15 = vpack.c.bf16 %v66_v14, %v65_v13  ;;  %v1831_v30 = vld [vmem:[%s2672_s3] ss:$0 sm:$0xff]  ;;  %1897 = vmatprep.mubr.msk.bf16.mxu1 %vm2320_vm1, %v2319_v38  ;;  %s1804_s16 = sshll.u32 %s2321_s15, 4  ;;  %s1805_s16 = int_to_ptr.vmem [resolvable:$true] %s1804_s16 }
  0x2d   :  { %135 = vmatpush1.bf16.msra.mxu0 %v2128_v4  ;;  %s2263_s17 = scalar_lea.vmem %s1805_s16, 2048  ;;  %p2268_p2 = scmp.lt.s32.totalorder %s1805_s16, %s1805_s16 }
  0x2e   :  { %136 = vmatprep.subr.bf16.mxu0 %v2129_v5  ;;  %p2264_p1 = scmp.ne.s32.totalorder %s1805_s16, %s2263_s17  ;;  %p2269_p3 = scmp.lt.s32.totalorder %s2263_s17, %s2263_s17 }
  0x30   :  { %p2270_p4 = por %p2269_p3, %p2268_p2 }
  0x31   :  { %137 = vmatpush1.bf16.msra.mxu0 %v2131_v6 }
  0x32   :  { %138 = vmatprep.subr.bf16.mxu0 %v2132_v7  ;;  %p2271_p5 = pnand %p2270_p4, %p2264_p1 }
  0x35   :  { %139 = vmatpush1.bf16.msra.mxu0 %v2134_v9 }
  0x36   :  { %1931 = vmatprep.subr.bf16.mxu0 %v2319_v38 }
  0x38   :  { %1829 = vmatmul.mubr.msk.bf16.vlgmr.msra.gmra.mxu0 %vm117_vm0, %v67_v12 }
  0x39   :  { %166 = vmatprep.mubr.bf16.mxu0 %v2318_v0 }
  0x40   :  { %1830 = vmatmul.mubr.msk.bf16.gmra.mxu0 %vm117_vm0, %v68_v15 }
  0x41   :  { %1933 = vmatprep.mubr.msk.bf16.mxu0 %vm2320_vm1, %v2319_v38 }
  0x9d   :  { %v193_v17 = vpop.permute.xlu0 %192 }
  0xf8   :  { %v158_v16 = vpop.f32.mrf.mxu0 }
  0xf9   :  { %v195_v20 = vadd.f32 %v193_v17, %v158_v16  ;;  %v182_v32 = vadd.f32 %v1831_v30, %v158_v16 }
  0xfa   :  { %v2376_v18 = vpop.f32.mrf.mxu0 }
  0xfc   :  { %v162_v19 = vpop.f32.mrf.mxu0 }
  0xfd   :  { %v196_v21 = vadd.f32 %v193_v17, %v162_v19  ;;  %v183_v36 = vadd.f32 %v1831_v30, %v162_v19 }
  0xfe   :  { %v2378_v22 = vpop.f32.mrf.mxu0 }
  0xff   :  { %v2015_v23 = vpack.i.bf16 %v196_v21, %v195_v20 }
 0x100   :  { %v168_v24 = vpop.f32.mrf.mxu0 }
 0x101   :  { %2016 = vrot.lane.b32.xlu0 %v2015_v23, %s2316_s1  ;;  %v197_v27 = vadd.f32 %v193_v17, %v168_v24  ;;  %v184_v39 = vadd.f32 %v1831_v30, %v168_v24 }
 0x102   :  { %v2381_v25 = vpop.f32.mrf.mxu0 }
 0x104   :  { %v172_v26 = vpop.f32.mrf.mxu0 }
 0x105   :  { %v198_v28 = vadd.f32 %v193_v17, %v172_v26  ;;  %v185_v40 = vadd.f32 %v1831_v30, %v172_v26 }
 0x107   :  { %v2020_v29 = vpack.i.bf16 %v198_v28, %v197_v27 }
 0x109   :  { %2021 = vrot.lane.b32.xlu0 %v2020_v29, %s2316_s1 }
 0x173   :  { %v2017_v31 = vpop.permute.xlu0 %2016 }
 0x174   :  { %v2018_v33 = vunpack.i.l.bf16 %v2017_v31  ;;  %v2019_v34 = vunpack.i.h.bf16 %v2017_v31 }
 0x176   :  { %v2025_v35 = vpack.i.bf16 %v2018_v33, %v182_v32  ;;  %v2027_v37 = vpack.i.bf16 %v2019_v34, %v183_v36 }
 0x178   :  { %2026 = vxpose.xlu1.b32.start [1/2] (short) (narrow) %v2025_v35, 64 }
 0x17b   :  { %v2022_v11 = vpop.permute.xlu0 %2021 }
 0x17c   :  { %2028 = vxpose.xlu1.b32.end [2/2] (short) (narrow) %v2027_v37, 64  ;;  %v2023_v13 = vunpack.i.l.bf16 %v2022_v11  ;;  %v2024_v15 = vunpack.i.h.bf16 %v2022_v11 }
 0x195   :  { %400 = vxpose.xlu1.b32.start [1/2] (short) (narrow) %v184_v39, 64 }
 0x199   :  { %401 = vxpose.xlu1.b32.end [2/2] (short) (narrow) %v185_v40, 64 }
 0x1f4   :  { %v2029_v41 = vpop.trf.xlu1 }
 0x1f5   :  { %v2030_v42 = vunpack.i.l.bf16 %v2029_v41  ;;  %v2033_v44 = vunpack.i.h.bf16 %v2029_v41 }
 0x1f7   :  { %432 = vxpose.xlu0.b32.start [1/2] (short) (narrow) %v2030_v42, 16 }
 0x1f8   :  { %v2034_v43 = vpop.trf.xlu1 }
 0x1f9   :  { %v2035_v45 = vunpack.i.l.bf16 %v2034_v43  ;;  %v2038_v46 = vunpack.i.h.bf16 %v2034_v43 }
 0x1fb   :  { %433 = vxpose.xlu0.b32.end [2/2] (short) (narrow) %v2035_v45, 16  ;;  %v288_v47 = vpack.c.bf16 %v2038_v46, %v2033_v44 }
 0x1fc   :  { %v2039_v48 = vpop.trf.xlu1 }
 0x1fd   :  { %1896 = vmatpush3.bf16.msra.mxu1 %v288_v47  ;;  %v2043_v50 = vunpack.i.h.bf16 %v2039_v48  ;;  %v2040_v55 = vunpack.i.l.bf16 %v2039_v48 }
 0x1fe   :  { %1901 = vmatprep.subr.bf16.mxu1 %v2319_v38 }
 0x200   :  { %v2044_v49 = vpop.trf.xlu1 }
 0x201   :  { %v2048_v51 = vunpack.i.h.bf16 %v2044_v49  ;;  %v2045_v57 = vunpack.i.l.bf16 %v2044_v49 }
 0x203   :  { %v289_v52 = vpack.c.bf16 %v2048_v51, %v2043_v50 }
 0x204   :  { %v2049_v53 = vpop.trf.xlu1 }
 0x205   :  { %v2050_v54 = vunpack.i.l.bf16 %v2049_v53  ;;  %v2053_v58 = vunpack.i.h.bf16 %v2049_v53 }
 0x207   :  { %v2069_v56 = vpack.i.bf16 %v2050_v54, %v2040_v55 }
 0x208   :  { %v2054_v59 = vpop.trf.xlu1 }
 0x209   :  { %v2058_v60 = vunpack.i.h.bf16 %v2054_v59  ;;  %v2055_v61 = vunpack.i.l.bf16 %v2054_v59  ;;  %2070 = vxpose.xlu1.b32.start [1/2] (short) (narrow) %v2069_v56, 16 }
 0x20b   :  { %v2071_v62 = vpack.i.bf16 %v2055_v61, %v2045_v57  ;;  %v290_v63 = vpack.c.bf16 %v2058_v60, %v2053_v58 }
 0x20c   :  { %v2059_v0 = vpop.trf.xlu1 }
 0x20d   :  { %2072 = vxpose.xlu1.b32.end [2/2] (short) (narrow) %v2071_v62, 16  ;;  %v2063_v2 = vunpack.i.h.bf16 %v2059_v0  ;;  %v2060_v4 = vunpack.i.l.bf16 %v2059_v0 }
 0x210   :  { %v2064_v1 = vpop.trf.xlu1 }
 0x211   :  { %v2068_v3 = vunpack.i.h.bf16 %v2064_v1  ;;  %v2065_v8 = vunpack.i.l.bf16 %v2064_v1 }
 0x213   :  { %v291_v5 = vpack.c.bf16 %v2068_v3, %v2063_v2 }
 0x214   :  { %v416_v6 = vpop.trf.xlu1 }
 0x215   :  { %v2083_v7 = vpack.i.bf16 %v416_v6, %v2060_v4 }
 0x217   :  { %2084 = vxpose.xlu0.b32.start [1/2] (short) (narrow) %v2083_v7, 16 }
 0x218   :  { %v417_v9 = vpop.trf.xlu1 }
 0x219   :  { %v2085_v10 = vpack.i.bf16 %v417_v9, %v2065_v8 }
 0x21b   :  { %2086 = vxpose.xlu0.b32.end [2/2] (short) (narrow) %v2085_v10, 16 }
 0x21c   :  { %v418_v12 = vpop.trf.xlu1 }
 0x21f   :  { %256 = vxpose.xlu0.b32.start [1/2] (short) (narrow) %v2023_v13, 64 }
 0x220   :  { %v419_v14 = vpop.trf.xlu1 }
 0x223   :  { %257 = vxpose.xlu0.b32.end [2/2] (short) (narrow) %v2024_v15, 64 }
 0x224   :  { %v420_v16 = vpop.trf.xlu1 }
 0x225   :  { %624 = vxpose.xlu1.b32.start [1/2] (short) (narrow) %v420_v16, 16 }
 0x228   :  { %v421_v17 = vpop.trf.xlu1 }
 0x229   :  { %625 = vxpose.xlu1.b32.end [2/2] (short) (narrow) %v421_v17, 16 }
 0x22c   :  { %v422_v19 = vpop.trf.xlu1 }
 0x22d   :  { %656 = vxpose.xlu1.b32.start [1/2] (short) (narrow) %v422_v19, 16 }
 0x230   :  { %v423_v20 = vpop.trf.xlu1 }
 0x231   :  { %657 = vxpose.xlu1.b32.end [2/2] (short) (narrow) %v423_v20, 16 }
 0x23c   :  { %592 = vxpose.xlu0.b32.start [1/2] (short) (narrow) %v418_v12, 16 }
 0x240   :  { %593 = vxpose.xlu0.b32.end [2/2] (short) (narrow) %v419_v14, 16 }
 0x273   :  { %v448_v21 = vpop.trf.xlu0 }
 0x277   :  { %v449_v23 = vpop.trf.xlu0 }
 0x278   :  { %v688_v24 = vpack.c.bf16 %v449_v23, %v448_v21 }
 0x27a   :  { %1898 = vmatmul.mubr.msk.bf16.vlgmr.msra.gmra.mxu1 %vm696_vm2, %v688_v24 }
 0x27b   :  { %1902 = vmatpush3.bf16.msra.mxu1 %v289_v52  ;;  %1903 = vmatprep.mubr.msk.bf16.mxu1 %vm2320_vm1, %v2319_v38 }
 0x27c   :  { %1907 = vmatprep.subr.bf16.mxu1 %v2319_v38 }
 0x285   :  { %v2073_v26 = vpop.trf.xlu1 }
 0x286   :  { %v2074_v27 = vunpack.i.l.bf16 %v2073_v26  ;;  %v2077_v31 = vunpack.i.h.bf16 %v2073_v26 }
 0x289   :  { %v2078_v28 = vpop.trf.xlu1 }
 0x28a   :  { %v2079_v29 = vunpack.i.l.bf16 %v2078_v28  ;;  %v2082_v32 = vunpack.i.h.bf16 %v2078_v28 }
 0x28c   :  { %v689_v30 = vpack.c.bf16 %v2079_v29, %v2074_v27  ;;  %v690_v33 = vpack.c.bf16 %v2082_v32, %v2077_v31 }
 0x28e   :  { %1904 = vmatmul.mubr.msk.bf16.vlgmr.msra.gmra.mxu1 %vm696_vm2, %v689_v30 }
 0x28f   :  { %1908 = vmatpush3.bf16.msra.mxu1 %v290_v63  ;;  %1909 = vmatprep.mubr.msk.bf16.mxu1 %vm2320_vm1, %v2319_v38 }
 0x290   :  { %1913 = vmatprep.subr.bf16.mxu1 %v2319_v38 }
 0x293   :  { %v2087_v34 = vpop.trf.xlu0 }
 0x294   :  { %v2088_v37 = vunpack.i.l.bf16 %v2087_v34  ;;  %v2091_v44 = vunpack.i.h.bf16 %v2087_v34 }
 0x296   :  { %1910 = vmatmul.mubr.msk.bf16.vlgmr.msra.gmra.mxu1 %vm696_vm2, %v690_v33  ;;  %v2465_v33 = vpop.f32.mrf.mxu0 }
 0x297   :  { %1914 = vmatpush3.bf16.msra.mxu1 %v291_v5  ;;  %v2092_v35 = vpop.trf.xlu0  ;;  %1915 = vmatprep.mubr.msk.bf16.mxu1 %vm2320_vm1, %v2319_v38 }
 0x298   :  { %v2093_v36 = vunpack.i.l.bf16 %v2092_v35  ;;  %1919 = vmatprep.subr.bf16.mxu1 %v2319_v38  ;;  %v2096_v42 = vunpack.i.h.bf16 %v2092_v35 }
 0x29a   :  { %v691_v40 = vpack.c.bf16 %v2093_v36, %v2088_v37  ;;  %v692_v46 = vpack.c.bf16 %v2096_v42, %v2091_v44 }
 0x29b   :  { %v272_v39 = vpop.trf.xlu0 }
 0x29e   :  { %1916 = vmatmul.mubr.msk.bf16.vlgmr.msra.gmra.mxu1 %vm696_vm2, %v691_v40 }
 0x29f   :  { %v273_v41 = vpop.trf.xlu0  ;;  %1921 = vmatprep.mubr.msk.bf16.mxu1 %vm2320_vm1, %v2319_v38 }
 0x2a0   :  { %v292_v43 = vpack.c.bf16 %v273_v41, %v272_v39 }
 0x2a1   :  { %v640_v49 = vpop.trf.xlu1 }
 0x2a2   :  { %1920 = vmatpush3.bf16.msra.mxu1 %v292_v43 }
 0x2a3   :  { %v274_v45 = vpop.trf.xlu0  ;;  %1925 = vmatprep.subr.bf16.mxu1 %v2319_v38 }
 0x2a5   :  { %v641_v51 = vpop.trf.xlu1 }
 0x2a6   :  { %1922 = vmatmul.mubr.msk.bf16.vlgmr.msra.gmra.mxu1 %vm696_vm2, %v692_v46  ;;  %v694_v54 = vpack.c.bf16 %v641_v51, %v640_v49 }
 0x2a7   :  { %v275_v47 = vpop.trf.xlu0  ;;  %1927 = vmatprep.mubr.msk.bf16.mxu1 %vm2320_vm1, %v2319_v38 }
 0x2a8   :  { %v293_v48 = vpack.c.bf16 %v275_v47, %v274_v45 }
 0x2a9   :  { %v672_v58 = vpop.trf.xlu1 }
 0x2aa   :  { %1926 = vmatpush3.bf16.msra.mxu1 %v293_v48 }
 0x2ab   :  { %v276_v50 = vpop.trf.xlu0  ;;  %1937 = vmatprep.subr.bf16.mxu1 %v2319_v38 }
 0x2ad   :  { %v673_v62 = vpop.trf.xlu1 }
 0x2ae   :  { %v695_v63 = vpack.c.bf16 %v673_v62, %v672_v58 }
 0x2af   :  { %v277_v52 = vpop.trf.xlu0 }
 0x2b0   :  { %v294_v53 = vpack.c.bf16 %v277_v52, %v276_v50 }
 0x2b2   :  { %1932 = vmatpush3.bf16.msra.mxu0 %v294_v53 }
 0x2b3   :  { %v278_v55 = vpop.trf.xlu0  ;;  %1943 = vmatprep.subr.bf16.mxu0 %v2319_v38 }
 0x2b5   :  { %1934 = vmatmul.mubr.msk.bf16.vlgmr.msra.gmra.mxu0 %vm696_vm2, %v694_v54 }
 0x2b6   :  { %1945 = vmatprep.mubr.msk.bf16.mxu0 %vm2320_vm1, %v2319_v38 }
 0x2b7   :  { %v279_v56 = vpop.trf.xlu0 }
 0x2b8   :  { %v295_v61 = vpack.c.bf16 %v279_v56, %v278_v55 }
 0x2bb   :  { %v608_v57 = vpop.trf.xlu0 }
 0x2bf   :  { %v609_v59 = vpop.trf.xlu0 }
 0x2c0   :  { %v693_v60 = vpack.c.bf16 %v609_v59, %v608_v57 }
 0x2c2   :  { %1928 = vmatmul.mubr.msk.bf16.vlgmr.msra.gmra.mxu1 %vm696_vm2, %v693_v60 }
 0x2c3   :  { %1938 = vmatpush3.bf16.msra.mxu1 %v295_v61  ;;  %1939 = vmatprep.mubr.msk.bf16.mxu1 %vm2320_vm1, %v2319_v38 }
 0x2c4   :  { %1949 = vmatprep.subr.bf16.mxu1 %v2319_v38 }
 0x2ca   :  { %1940 = vmatmul.mubr.msk.bf16.vlgmr.msra.gmra.mxu1 %vm696_vm2, %v695_v63 }
 0x2cb   :  { %1951 = vmatprep.mubr.msk.bf16.mxu1 %vm2320_vm1, %v2319_v38 }
 0x33a   :  { %v2425_v0 = vpop.f32.mrf.mxu1 }
 0x33b   :  { %v1049_v1 = vsel %vm696_vm2, %v2425_v0, -inf }
 0x33c   :  { %v1899_v2 = vpop.f32.mrf.mxu1  ;;  %1050 = vmax.xlane.f32.xlu1 %v1049_v1 }
 0x33e   :  { %v2429_v3 = vpop.f32.mrf.mxu1 }
 0x33f   :  { %v1052_v4 = vsel %vm696_vm2, %v2429_v3, -inf }
 0x340   :  { %1053 = vmax.xlane.f32.xlu0 %v1052_v4  ;;  %v1900_v5 = vpop.f32.mrf.mxu1 }
 0x34e   :  { %v2433_v6 = vpop.f32.mrf.mxu1 }
 0x34f   :  { %v1055_v7 = vsel %vm696_vm2, %v2433_v6, -inf }
 0x350   :  { %1056 = vmax.xlane.f32.xlu1 %v1055_v7  ;;  %v1905_v8 = vpop.f32.mrf.mxu1 }
 0x352   :  { %v2437_v9 = vpop.f32.mrf.mxu1 }
 0x353   :  { %v1058_v10 = vsel %vm696_vm2, %v2437_v9, -inf }
 0x354   :  { %1059 = vmax.xlane.f32.xlu1 %v1058_v10  ;;  %v1906_v11 = vpop.f32.mrf.mxu1 }
 0x356   :  { %v2441_v12 = vpop.f32.mrf.mxu1 }
 0x357   :  { %v1061_v13 = vsel %vm696_vm2, %v2441_v12, -inf }
 0x358   :  { %1062 = vmax.xlane.f32.xlu1 %v1061_v13  ;;  %v1911_v14 = vpop.f32.mrf.mxu1 }
 0x35a   :  { %v2445_v15 = vpop.f32.mrf.mxu1 }
 0x35b   :  { %v1064_v16 = vsel %vm696_vm2, %v2445_v15, -inf }
 0x35c   :  { %1065 = vmax.xlane.f32.xlu1 %v1064_v16  ;;  %v1912_v17 = vpop.f32.mrf.mxu1 }
 0x35e   :  { %v2449_v19 = vpop.f32.mrf.mxu1 }
 0x35f   :  { %v1067_v20 = vsel %vm696_vm2, %v2449_v19, -inf }
 0x360   :  { %1068 = vmax.xlane.f32.xlu0 %v1067_v20  ;;  %v1917_v21 = vpop.f32.mrf.mxu1 }
 0x362   :  { %v2453_v23 = vpop.f32.mrf.mxu1 }
 0x363   :  { %v1070_v24 = vsel %vm696_vm2, %v2453_v23, -inf }
 0x364   :  { %1071 = vmax.xlane.f32.xlu1 %v1070_v24  ;;  %v1918_v26 = vpop.f32.mrf.mxu1 }
 0x366   :  { %v2457_v27 = vpop.f32.mrf.mxu1 }
 0x367   :  { %v1073_v28 = vsel %vm696_vm2, %v2457_v27, -inf }
 0x368   :  { %1074 = vmax.xlane.f32.xlu0 %v1073_v28  ;;  %v1923_v29 = vpop.f32.mrf.mxu1 }
 0x36a   :  { %v2461_v30 = vpop.f32.mrf.mxu1 }
 0x36b   :  { %v1076_v31 = vsel %vm696_vm2, %v2461_v30, -inf }
 0x36c   :  { %1077 = vmax.xlane.f32.xlu1 %v1076_v31  ;;  %v1924_v32 = vpop.f32.mrf.mxu1 }
 0x375   :  { %v2467_v34 = vpop.f32.mrf.mxu0 }
 0x376   :  { %v1085_v44 = vsel %vm696_vm2, %v2467_v34, -inf }
 0x377   :  { %v1935_v35 = vpop.f32.mrf.mxu0 }
 0x379   :  { %v2469_v36 = vpop.f32.mrf.mxu0 }
 0x37a   :  { %v1088_v48 = vsel %vm696_vm2, %v2469_v36, -inf }
 0x37b   :  { %v1936_v37 = vpop.f32.mrf.mxu0 }
 0x382   :  { %v2471_v39 = vpop.f32.mrf.mxu1 }
 0x383   :  { %v1079_v40 = vsel %vm696_vm2, %v2471_v39, -inf }
 0x384   :  { %1080 = vmax.xlane.f32.xlu0 %v1079_v40  ;;  %v1929_v41 = vpop.f32.mrf.mxu1 }
 0x386   :  { %v2475_v42 = vpop.f32.mrf.mxu1 }
 0x387   :  { %v1082_v43 = vsel %vm696_vm2, %v2475_v42, -inf }
 0x388   :  { %1083 = vmax.xlane.f32.xlu1 %v1082_v43  ;;  %v1930_v45 = vpop.f32.mrf.mxu1  ;;  %1086 = vmax.xlane.f32.xlu0 %v1085_v44 }
 0x38a   :  { %v2481_v46 = vpop.f32.mrf.mxu1 }
 0x38b   :  { %v1091_v47 = vsel %vm696_vm2, %v2481_v46, -inf }
 0x38c   :  { %v1941_v49 = vpop.f32.mrf.mxu1  ;;  %1092 = vmax.xlane.f32.xlu0 %v1091_v47  ;;  %1089 = vmax.xlane.f32.xlu1 %v1088_v48 }
 0x38e   :  { %v2487_v50 = vpop.f32.mrf.mxu1 }
 0x38f   :  { %v1094_v51 = vsel %vm696_vm2, %v2487_v50, -inf }
 0x390   :  { %v1942_v52 = vpop.f32.mrf.mxu1  ;;  %1095 = vmax.xlane.f32.xlu1 %v1094_v51 }
 0x3c5   :  { %v1051_v53 = vpop.xlane.xlu1 %1050 }
 0x3c6   :  { %v1097_v54 = vsub.f32 %v2425_v0, %v1051_v53 }
 0x3c8   :  { %v1113_v55 = vmul.f32 1.442695, %v1097_v54 }
 0x3c9   :  { %v1054_v56 = vpop.xlane.xlu0 %1053 }
 0x3ca   :  { %2139 = vpow2.f32 %v1113_v55  ;;  %v1098_v57 = vsub.f32 %v2429_v3, %v1054_v56 }
 0x3cc   :  { %v1115_v58 = vmul.f32 1.442695, %v1098_v57 }
 0x3ce   :  { %2141 = vpow2.f32 %v1115_v58 }
 0x3d7   :  { %v2493_v59 = vpop.eup %2139 }
 0x3d8   :  { %v1145_v60 = vsel %vm696_vm2, %v2493_v59, 0.0 }
 0x3d9   :  { %v1057_v61 = vpop.xlane.xlu1 %1056  ;;  %1146 = vadd.xlane.f32.xlu0 %v1145_v60 }
 0x3da   :  { %v1099_v62 = vsub.f32 %v2433_v6, %v1057_v61 }
 0x3db   :  { %v2498_v63 = vpop.eup %2141 }
 0x3dc   :  { %v1117_v1 = vmul.f32 1.442695, %v1099_v62  ;;  %v1148_v0 = vsel %vm696_vm2, %v2498_v63, 0.0 }
 0x3dd   :  { %v1060_v2 = vpop.xlane.xlu1 %1059  ;;  %1149 = vadd.xlane.f32.xlu1 %v1148_v0 }
 0x3de   :  { %2143 = vpow2.f32 %v1117_v1  ;;  %v1100_v3 = vsub.f32 %v2437_v9, %v1060_v2 }
 0x3e0   :  { %v1119_v4 = vmul.f32 1.442695, %v1100_v3 }
 0x3e1   :  { %v1063_v5 = vpop.xlane.xlu1 %1062 }
 0x3e2   :  { %2145 = vpow2.f32 %v1119_v4  ;;  %v1101_v7 = vsub.f32 %v2441_v12, %v1063_v5 }
 0x3e4   :  { %v1121_v8 = vmul.f32 1.442695, %v1101_v7 }
 0x3e5   :  { %v1066_v10 = vpop.xlane.xlu1 %1065 }
 0x3e6   :  { %2147 = vpow2.f32 %v1121_v8  ;;  %v1102_v6 = vsub.f32 %v2445_v15, %v1066_v10 }
 0x3e8   :  { %v1123_v11 = vmul.f32 1.442695, %v1102_v6 }
 0x3e9   :  { %v1069_v13 = vpop.xlane.xlu0 %1068 }
 0x3ea   :  { %2149 = vpow2.f32 %v1123_v11  ;;  %v1103_v14 = vsub.f32 %v2449_v19, %v1069_v13 }
 0x3eb   :  { %v2506_v16 = vpop.eup %2143 }
 0x3ec   :  { %v1125_v17 = vmul.f32 1.442695, %v1103_v14  ;;  %v1151_v9 = vsel %vm696_vm2, %v2506_v16, 0.0  ;;  %v1833_v14 = vld [vmem:[%s2672_s3 + $0x2] ss:$0 sm:$0xff] }
 0x3ed   :  { %v1072_v20 = vpop.xlane.xlu1 %1071  ;;  %1152 = vadd.xlane.f32.xlu0 %v1151_v9  ;;  %v205_v9 = vadd.f32 %v1833_v14, %v2378_v22 }
 0x3ee   :  { %2151 = vpow2.f32 %v1125_v17  ;;  %v1104_v12 = vsub.f32 %v2453_v23, %v1072_v20  ;;  %v204_v17 = vadd.f32 %v1833_v14, %v2376_v18 }
 0x3ef   :  { %v2511_v21 = vpop.eup %2145 }
 0x3f0   :  { %v1127_v24 = vmul.f32 1.442695, %v1104_v12  ;;  %v1154_v15 = vsel %vm696_vm2, %v2511_v21, 0.0 }
 0x3f1   :  { %1155 = vadd.xlane.f32.xlu1 %v1154_v15  ;;  %v1075_v37 = vpop.xlane.xlu0 %1074  ;;  %v207_v15 = vadd.f32 %v1833_v14, %v2465_v33 }
 0x3f2   :  { %2153 = vpow2.f32 %v1127_v24  ;;  %v1105_v43 = vsub.f32 %v2457_v27, %v1075_v37  ;;  %v206_v24 = vadd.f32 %v1833_v14, %v2381_v25 }
 0x3f3   :  { %v2515_v19 = vpop.eup %2147 }
 0x3f4   :  { %v1157_v26 = vsel %vm696_vm2, %v2515_v19, 0.0  ;;  %v1129_v51 = vmul.f32 1.442695, %v1105_v43 }
 0x3f5   :  { %1158 = vadd.xlane.f32.xlu0 %v1157_v26  ;;  %v1078_v40 = vpop.xlane.xlu1 %1077 }
 0x3f6   :  { %v1106_v48 = vsub.f32 %v2461_v30, %v1078_v40 }
 0x3f7   :  { %v2519_v28 = vpop.eup %2149 }
 0x3f8   :  { %v1160_v29 = vsel %vm696_vm2, %v2519_v28, 0.0  ;;  %v1131_v56 = vmul.f32 1.442695, %v1106_v48 }
 0x3f9   :  { %1161 = vadd.xlane.f32.xlu1 %v1160_v29 }
 0x3fb   :  { %v2523_v23 = vpop.eup %2151 }
 0x3fc   :  { %v1163_v31 = vsel %vm696_vm2, %v2523_v23, 0.0 }
 0x3fd   :  { %1164 = vadd.xlane.f32.xlu0 %v1163_v31 }
 0x3ff   :  { %v2527_v32 = vpop.eup %2153 }
 0x400   :  { %v1166_v35 = vsel %vm696_vm2, %v2527_v32, 0.0 }
 0x401   :  { %1167 = vadd.xlane.f32.xlu1 %v1166_v35 }
 0x40d   :  { %v1081_v41 = vpop.xlane.xlu0 %1080 }
 0x40e   :  { %v1107_v52 = vsub.f32 %v2471_v39, %v1081_v41 }
 0x410   :  { %v1133_v27 = vmul.f32 1.442695, %v1107_v52 }
 0x411   :  { %v1084_v44 = vpop.xlane.xlu1 %1083  ;;  %v1087_v45 = vpop.xlane.xlu0 %1086 }
 0x412   :  { %v1109_v47 = vsub.f32 %v2467_v34, %v1087_v45  ;;  %v1108_v57 = vsub.f32 %v2475_v42, %v1084_v44 }
 0x414   :  { %v1137_v49 = vmul.f32 1.442695, %v1109_v47  ;;  %v1135_v30 = vmul.f32 1.442695, %v1108_v57 }
 0x415   :  { %v1090_v53 = vpop.xlane.xlu1 %1089  ;;  %v1093_v54 = vpop.xlane.xlu0 %1092 }
 0x416   :  { %v1110_v55 = vsub.f32 %v2469_v36, %v1090_v53  ;;  %2155 = vpow2.f32 %v1137_v49  ;;  %v1111_v60 = vsub.f32 %v2481_v46, %v1093_v54 }
 0x417   :  { %2157 = vpow2.f32 %v1129_v51 }
 0x418   :  { %v1139_v58 = vmul.f32 1.442695, %v1110_v55  ;;  %v1141_v61 = vmul.f32 1.442695, %v1111_v60 }
 0x419   :  { %v1096_v34 = vpop.xlane.xlu1 %1095 }
 0x41a   :  { %2159 = vpow2.f32 %v1139_v58  ;;  %v1112_v39 = vsub.f32 %v2487_v50, %v1096_v34 }
 0x41b   :  { %2161 = vpow2.f32 %v1131_v56 }
 0x41c   :  { %2163 = vpow2.f32 %v1133_v27  ;;  %v1143_v36 = vmul.f32 1.442695, %v1112_v39 }
 0x41d   :  { %2165 = vpow2.f32 %v1135_v30 }
 0x41e   :  { %2167 = vpow2.f32 %v1141_v61 }
 0x41f   :  { %2169 = vpow2.f32 %v1143_v36 }
 0x423   :  { %v2539_v62 = vpop.eup %2155 }
 0x424   :  { %v1181_v42 = vsel %vm696_vm2, %v2539_v62, 0.0  ;;  %v2543_v1 = vpop.eup %2157 }
 0x425   :  { %1182 = vadd.xlane.f32.xlu0 %v1181_v42  ;;  %v1169_v2 = vsel %vm696_vm2, %v2543_v1, 0.0 }
 0x427   :  { %v2545_v46 = vpop.eup %2159 }
 0x428   :  { %v2547_v0 = vpop.eup %2161  ;;  %v1184_v50 = vsel %vm696_vm2, %v2545_v46, 0.0 }
 0x429   :  { %v2553_v3 = vpop.eup %2163  ;;  %1170 = vadd.xlane.f32.xlu0 %v1169_v2  ;;  %1185 = vadd.xlane.f32.xlu1 %v1184_v50  ;;  %v1172_v7 = vsel %vm696_vm2, %v2547_v0, 0.0 }
 0x42a   :  { %v2555_v4 = vpop.eup %2165  ;;  %v1175_v5 = vsel %vm696_vm2, %v2553_v3, 0.0 }
 0x42b   :  { %v2561_v8 = vpop.eup %2167  ;;  %v1178_v6 = vsel %vm696_vm2, %v2555_v4, 0.0 }
 0x42c   :  { %v1187_v10 = vsel %vm696_vm2, %v2561_v8, 0.0  ;;  %v2567_v11 = vpop.eup %2169 }
 0x42d   :  { %1176 = vadd.xlane.f32.xlu0 %v1175_v5  ;;  %1173 = vadd.xlane.f32.xlu1 %v1172_v7  ;;  %v1190_v13 = vsel %vm696_vm2, %v2567_v11, 0.0 }
 0x431   :  { %1188 = vadd.xlane.f32.xlu0 %v1187_v10  ;;  %1179 = vadd.xlane.f32.xlu1 %v1178_v6 }
 0x435   :  { %1191 = vadd.xlane.f32.xlu1 %v1190_v13 }
 0x45e   :  { %296 = vxpose.xlu0.b32.start [1/2] (short) (narrow) %v204_v17, 64 }
 0x462   :  { %v1147_v20 = vpop.xlane.xlu0 %1146  ;;  %297 = vxpose.xlu0.b32.end [2/2] (short) (narrow) %v205_v9, 64 }
 0x463   :  { %2171 = vrcp.f32 %v1147_v20 }
 0x466   :  { %v1150_v12 = vpop.xlane.xlu1 %1149 }
 0x467   :  { %2173 = vrcp.f32 %v1150_v12 }
 0x468   :  { %328 = vxpose.xlu1.b32.start [1/2] (short) (narrow) %v206_v24, 64 }
 0x46c   :  { %329 = vxpose.xlu1.b32.end [2/2] (short) (narrow) %v207_v15, 64 }
 0x470   :  { %v2172_v26 = vpop.eup %2171 }
 0x471   :  { %v1209_v29 = vmul.f32 %v2172_v26, %v2493_v59 }
 0x473   :  { %1225 = vst.msk [vmem:[#allocation9] sm:$0xff] %vm696_vm2, %v1209_v29 }
 0x474   :  { %v2174_v18 = vpop.eup %2173 }
 0x475   :  { %v1210_v31 = vmul.f32 %v2174_v18, %v2498_v63 }
 0x476   :  { %v1153_v22 = vpop.xlane.xlu0 %1152 }
 0x477   :  { %2175 = vrcp.f32 %v1153_v22  ;;  %1226 = vst.msk [vmem:[#allocation9 + $0x8] sm:$0xff] %vm696_vm2, %v1210_v31  ;;  %v1241_v35 = vpack.c.bf16 %v1210_v31, %v1209_v29 }
 0x479   :  { %v1253_v25 = vsel %vm696_vm2, %v1241_v35, 0 }
 0x47a   :  { %1944 = vmatpush3.bf16.xpose.msra.mxu0 %v1253_v25  ;;  %v1156_v37 = vpop.xlane.xlu1 %1155 }
 0x47b   :  { %2177 = vrcp.f32 %v1156_v37  ;;  %1955 = vmatprep.subr.bf16.mxu0 %v2319_v38 }
 0x47e   :  { %v1159_v33 = vpop.xlane.xlu0 %1158 }
 0x47f   :  { %2179 = vrcp.f32 %v1159_v33 }
 0x482   :  { %v1162_v59 = vpop.xlane.xlu1 %1161 }
 0x483   :  { %2181 = vrcp.f32 %v1162_v59 }
 0x484   :  { %v2176_v40 = vpop.eup %2175 }
 0x485   :  { %v1211_v41 = vmul.f32 %v2176_v40, %v2506_v16 }
 0x486   :  { %v1165_v63 = vpop.xlane.xlu0 %1164 }
 0x487   :  { %2183 = vrcp.f32 %v1165_v63  ;;  %1227 = vst.msk [vmem:[#allocation9 + $0x10] sm:$0xff] %vm696_vm2, %v1211_v41 }
 0x488   :  { %v2178_v43 = vpop.eup %2177 }
 0x489   :  { %v1212_v44 = vmul.f32 %v2178_v43, %v2511_v21 }
 0x48a   :  { %v1168_v45 = vpop.xlane.xlu1 %1167 }
 0x48b   :  { %2185 = vrcp.f32 %v1168_v45  ;;  %1228 = vst.msk [vmem:[#allocation9 + $0x18] sm:$0xff] %vm696_vm2, %v1212_v44  ;;  %v1242_v47 = vpack.c.bf16 %v1212_v44, %v1211_v41 }
 0x48c   :  { %v2180_v48 = vpop.eup %2179 }
 0x48d   :  { %v1300_v49 = vsel %vm696_vm2, %v1242_v47, 0  ;;  %v1213_v51 = vmul.f32 %v2180_v48, %v2515_v19 }
 0x48e   :  { %1950 = vmatpush3.bf16.xpose.msra.mxu1 %v1300_v49 }
 0x48f   :  { %1229 = vst.msk [vmem:[#allocation9 + $0x20] sm:$0xff] %vm696_vm2, %v1213_v51  ;;  %1961 = vmatprep.subr.bf16.mxu1 %v2319_v38 }
 0x490   :  { %v2182_v16 = vpop.eup %2181 }
 0x491   :  { %v1214_v52 = vmul.f32 %v2182_v16, %v2519_v28 }
 0x493   :  { %1230 = vst.msk [vmem:[#allocation9 + $0x28] sm:$0xff] %vm696_vm2, %v1214_v52  ;;  %v1243_v21 = vpack.c.bf16 %v1214_v52, %v1213_v51 }
 0x494   :  { %v2184_v53 = vpop.eup %2183 }
 0x495   :  { %v1215_v54 = vmul.f32 %v2184_v53, %v2523_v23  ;;  %v1347_v9 = vsel %vm696_vm2, %v1243_v21, 0  ;;  %v2135_v53 = vld [vmem:[#allocation7 + $0x18] sm:$0xff]  }
 0x497   :  { %1231 = vst.msk [vmem:[#allocation9 + $0x30] sm:$0xff] %vm696_vm2, %v1215_v54 }
 0x498   :  { %v2186_v55 = vpop.eup %2185 }
 0x499   :  { %v1216_v56 = vmul.f32 %v2186_v55, %v2527_v32 }
 0x49b   :  { %1232 = vst.msk [vmem:[#allocation9 + $0x38] sm:$0xff] %vm696_vm2, %v1216_v56  ;;  %v1244_v19 = vpack.c.bf16 %v1216_v56, %v1215_v54  ;;  %v2136_v54 = vld [vmem:[#allocation7 + $0x10] sm:$0xff]  }
 0x49d   :  { %v1394_v24 = vsel %vm696_vm2, %v1244_v19, 0 }
 0x4ae   :  { %v1183_v57 = vpop.xlane.xlu0 %1182 }
 0x4af   :  { %2187 = vrcp.f32 %v1183_v57 }
 0x4b2   :  { %v1171_v58 = vpop.xlane.xlu0 %1170  ;;  %v1186_v27 = vpop.xlane.xlu1 %1185 }
 0x4b3   :  { %2189 = vrcp.f32 %v1171_v58 }
 0x4b4   :  { %2191 = vrcp.f32 %v1186_v27 }
 0x4b6   :  { %v1177_v28 = vpop.xlane.xlu0 %1176  ;;  %v1174_v60 = vpop.xlane.xlu1 %1173 }
 0x4b7   :  { %2193 = vrcp.f32 %v1177_v28 }
 0x4b8   :  { %2195 = vrcp.f32 %v1174_v60 }
 0x4ba   :  { %v1189_v34 = vpop.xlane.xlu0 %1188  ;;  %v1180_v23 = vpop.xlane.xlu1 %1179 }
 0x4bb   :  { %2197 = vrcp.f32 %v1189_v34 }
 0x4bc   :  { %v2188_v30 = vpop.eup %2187  ;;  %2199 = vrcp.f32 %v1180_v23 }
 0x4bd   :  { %v2599_v32 = vmul.f32 %v2188_v30, %v2539_v62 }
 0x4be   :  { %v1192_v61 = vpop.xlane.xlu1 %1191 }
 0x4bf   :  { %2201 = vrcp.f32 %v1192_v61  ;;  %1237 = vst.msk [vmem:[#allocation9 + $0x60] sm:$0xff] %vm696_vm2, %v2599_v32 }
 0x4c0   :  { %v2190_v39 = vpop.eup %2189 }
 0x4c1   :  { %v2192_v36 = vpop.eup %2191  ;;  %v1217_v42 = vmul.f32 %v2190_v39, %v2543_v1  ;;  %v2137_v39 = vld [vmem:[#allocation7 + $0x8] sm:$0xff]  }
 0x4c2   :  { %v1222_v2 = vmul.f32 %v2192_v36, %v2545_v46 }
 0x4c3   :  { %1233 = vst.msk [vmem:[#allocation9 + $0x40] sm:$0xff] %vm696_vm2, %v1217_v42 }
 0x4c4   :  { %v2194_v50 = vpop.eup %2193  ;;  %1238 = vst.msk [vmem:[#allocation9 + $0x68] sm:$0xff] %vm696_vm2, %v1222_v2  ;;  %v1247_v59 = vpack.c.bf16 %v1222_v2, %v2599_v32 }
 0x4c5   :  { %v2196_v5 = vpop.eup %2195  ;;  %v1219_v62 = vmul.f32 %v2194_v50, %v2553_v3 }
 0x4c6   :  { %v1218_v7 = vmul.f32 %v2196_v5, %v2547_v0  ;;  %v1535_v45 = vsel %vm696_vm2, %v1247_v59, 0 }
 0x4c7   :  { %1235 = vst.msk [vmem:[#allocation9 + $0x50] sm:$0xff] %vm696_vm2, %v1219_v62 }
 0x4c8   :  { %v2198_v10 = vpop.eup %2197  ;;  %1234 = vst.msk [vmem:[#allocation9 + $0x48] sm:$0xff] %vm696_vm2, %v1218_v7  ;;  %v1245_v29 = vpack.c.bf16 %v1218_v7, %v1217_v42 }
 0x4c9   :  { %v2200_v6 = vpop.eup %2199  ;;  %v1223_v1 = vmul.f32 %v2198_v10, %v2561_v8 }
 0x4ca   :  { %v1220_v46 = vmul.f32 %v2200_v6, %v2555_v4  ;;  %v1441_v35 = vsel %vm696_vm2, %v1245_v29, 0 }
 0x4cb   :  { %1239 = vst.msk [vmem:[#allocation9 + $0x70] sm:$0xff] %vm696_vm2, %v1223_v1 }
 0x4cc   :  { %v2202_v13 = vpop.eup %2201  ;;  %1236 = vst.msk [vmem:[#allocation9 + $0x58] sm:$0xff] %vm696_vm2, %v1220_v46  ;;  %v1246_v33 = vpack.c.bf16 %v1220_v46, %v1219_v62  ;;  %v2138_v62 = vld [vmem:[#allocation7] sm:$0xff]  }
 0x4cd   :  { %v1224_v14 = vmul.f32 %v2202_v13, %v2567_v11 }
 0x4ce   :  { %v1488_v44 = vsel %vm696_vm2, %v1246_v33, 0 }
 0x4cf   :  { %1240 = vst.msk [vmem:[#allocation9 + $0x78] sm:$0xff] %vm696_vm2, %v1224_v14  ;;  %v1248_v49 = vpack.c.bf16 %v1224_v14, %v1223_v1 }
 0x4d1   :  { %v1582_v16 = vsel %vm696_vm2, %v1248_v49, 0 }
 0x4da   :  { %v312_v0 = vpop.trf.xlu0 }
 0x4de   :  { %v313_v3 = vpop.trf.xlu0 }
 0x4df   :  { %v360_v17 = vpack.c.bf16 %v313_v3, %v312_v0 }
 0x4e1   :  { %1946 = vmatmul.mubr.msk.bf16.vlgmr.msra.gmra.mxu0 %vm696_vm2, %v360_v17 }
 0x4e2   :  { %1956 = vmatpush3.bf16.xpose.msra.mxu0 %v1347_v9  ;;  %v314_v8 = vpop.trf.xlu0  ;;  %1957 = vmatprep.mubr.msk.bf16.mxu0 %vm2320_vm1, %v2319_v38 }
 0x4e3   :  { %1967 = vmatprep.subr.bf16.mxu0 %v2319_v38 }
 0x4e4   :  { %v344_v4 = vpop.trf.xlu1 }
 0x4e6   :  { %v315_v20 = vpop.trf.xlu0 }
 0x4e7   :  { %v361_v12 = vpack.c.bf16 %v315_v20, %v314_v8 }
 0x4e8   :  { %v345_v11 = vpop.trf.xlu1 }
 0x4e9   :  { %1952 = vmatmul.mubr.msk.bf16.vlgmr.msra.gmra.mxu1 %vm696_vm2, %v361_v12  ;;  %v364_v41 = vpack.c.bf16 %v345_v11, %v344_v4 }
 0x4ea   :  { %1962 = vmatpush3.bf16.xpose.msra.mxu1 %v1394_v24  ;;  %v316_v15 = vpop.trf.xlu0  ;;  %1963 = vmatprep.mubr.msk.bf16.mxu1 %vm2320_vm1, %v2319_v38 }
 0x4eb   :  { %1973 = vmatprep.subr.bf16.mxu1 %v2319_v38 }
 0x4ec   :  { %v346_v26 = vpop.trf.xlu1 }
 0x4ee   :  { %v317_v18 = vpop.trf.xlu0 }
 0x4ef   :  { %v362_v31 = vpack.c.bf16 %v317_v18, %v316_v15 }
 0x4f0   :  { %v347_v22 = vpop.trf.xlu1 }
 0x4f1   :  { %1958 = vmatmul.mubr.msk.bf16.vlgmr.msra.gmra.mxu0 %vm696_vm2, %v362_v31  ;;  %v365_v51 = vpack.c.bf16 %v347_v22, %v346_v26 }
 0x4f2   :  { %1968 = vmatpush3.bf16.xpose.msra.mxu0 %v1441_v35  ;;  %v318_v25 = vpop.trf.xlu0  ;;  %1969 = vmatprep.mubr.msk.bf16.mxu0 %vm2320_vm1, %v2319_v38 }
 0x4f3   :  { %1979 = vmatprep.subr.bf16.mxu0 %v2319_v38 }
 0x4f4   :  { %v348_v37 = vpop.trf.xlu1 }
 0x4f6   :  { %v319_v40 = vpop.trf.xlu0 }
 0x4f7   :  { %v363_v63 = vpack.c.bf16 %v319_v40, %v318_v25 }
 0x4f8   :  { %v349_v43 = vpop.trf.xlu1 }
 0x4f9   :  { %1964 = vmatmul.mubr.msk.bf16.vlgmr.msra.gmra.mxu1 %vm696_vm2, %v363_v63  ;;  %1970 = vmatmul.mubr.msk.bf16.vlgmr.msra.gmra.mxu0 %vm696_vm2, %v364_v41  ;;  %v366_v48 = vpack.c.bf16 %v349_v43, %v348_v37 }
 0x4fa   :  { %1974 = vmatpush3.bf16.xpose.msra.mxu1 %v1488_v44  ;;  %1980 = vmatpush3.bf16.xpose.msra.mxu0 %v1535_v45 }
 0x4fb   :  { %1975 = vmatprep.mubr.msk.bf16.mxu1 %vm2320_vm1, %v2319_v38  ;;  %1981 = vmatprep.mubr.msk.bf16.mxu0 %vm2320_vm1, %v2319_v38 }
 0x4fc   :  { %1985 = vmatprep.subr.bf16.mxu1 %v2319_v38  ;;  %v350_v47 = vpop.trf.xlu1  ;;  %1991 = vmatprep.subr.bf16.mxu0 %v2135_v53 }
 0x500   :  { %v351_v52 = vpop.trf.xlu1 }
 0x501   :  { %1976 = vmatmul.mubr.msk.bf16.vlgmr.msra.gmra.mxu1 %vm696_vm2, %v365_v51  ;;  %1982 = vmatmul.mubr.msk.bf16.vlgmr.msra.gmra.mxu0 %vm696_vm2, %v366_v48  ;;  %v367_v21 = vpack.c.bf16 %v351_v52, %v350_v47 }
 0x502   :  { %1986 = vmatpush3.bf16.xpose.msra.mxu1 %v1582_v16  ;;  %1987 = vmatprep.mubr.msk.bf16.mxu1 %vm2320_vm1, %v2319_v38 }
 0x503   :  { %1992 = vmatpush3.bf16.msra.mxu0 %v2135_v53 }
 0x504   :  { %1993 = vmatprep.subr.bf16.mxu0 %v2136_v54 }
 0x507   :  { %1994 = vmatpush3.bf16.msra.mxu0 %v2136_v54 }
 0x508   :  { %1995 = vmatprep.subr.bf16.mxu0 %v2137_v39 }
 0x509   :  { %1988 = vmatmul.mubr.msk.bf16.vlgmr.msra.gmra.mxu1 %vm696_vm2, %v367_v21 }
 0x50b   :  { %1996 = vmatpush3.bf16.msra.mxu0 %v2137_v39 }
 0x50c   :  { %1997 = vmatprep.subr.bf16.mxu0 %v2138_v62 }
 0x50f   :  { %1998 = vmatpush3.bf16.msra.mxu0 %v2138_v62 }
 0x5a1   :  { %v1289_v55 = vpop.f32.mrf.mxu0 }
 0x5a3   :  { %v1947_v56 = vpop.f32.mrf.mxu0 }
 0x5a5   :  { %v1292_v19 = vpop.f32.mrf.mxu0 }
 0x5a7   :  { %v1948_v57 = vpop.f32.mrf.mxu0 }
 0x5a9   :  { %v1336_v58 = vpop.f32.mrf.mxu1 }
 0x5ab   :  { %v1953_v27 = vpop.f32.mrf.mxu1 }
 0x5ad   :  { %v1339_v28 = vpop.f32.mrf.mxu1 }
 0x5af   :  { %v1954_v60 = vpop.f32.mrf.mxu1 }
 0x5b1   :  { %v1383_v34 = vpop.f32.mrf.mxu0 }
 0x5b3   :  { %v1959_v23 = vpop.f32.mrf.mxu0 }
 0x5b5   :  { %v1386_v38 = vpop.f32.mrf.mxu0 }
 0x5b7   :  { %v1960_v30 = vpop.f32.mrf.mxu0 }
 0x5b9   :  { %v1430_v32 = vpop.f32.mrf.mxu1  ;;  %v1477_v61 = vpop.f32.mrf.mxu0 }
 0x5ba   :  { %v2097_v36 = vpack.i.bf16 %v1477_v61, %v1289_v55 }
 0x5bb   :  { %v1965_v42 = vpop.f32.mrf.mxu1  ;;  %v1971_v2 = vpop.f32.mrf.mxu0 }
 0x5bc   :  { %2098 = vxpose.xlu0.b32.start [1/8] (short) (narrow) %v2097_v36, 16 }
 0x5bd   :  { %v1433_v50 = vpop.f32.mrf.mxu1  ;;  %v1480_v5 = vpop.f32.mrf.mxu0 }
 0x5be   :  { %v2099_v7 = vpack.i.bf16 %v1480_v5, %v1292_v19 }
 0x5bf   :  { %v1966_v10 = vpop.f32.mrf.mxu1  ;;  %v1972_v6 = vpop.f32.mrf.mxu0 }
 0x5c0   :  { %2100 = vxpose.xlu0.b32.cont [2/8] (short) (narrow) %v2099_v7, 16 }
 0x5c1   :  { %v1524_v1 = vpop.f32.mrf.mxu1  ;;  %v1571_v46 = vpop.f32.mrf.mxu0 }
 0x5c2   :  { %v2101_v13 = vpack.i.bf16 %v1524_v1, %v1336_v58  ;;  %v2105_v12 = vpack.i.bf16 %v1571_v46, %v1383_v34 }
 0x5c3   :  { %v1977_v14 = vpop.f32.mrf.mxu1  ;;  %v1983_v0 = vpop.f32.mrf.mxu0 }
 0x5c4   :  { %2102 = vxpose.xlu0.b32.cont [3/8] (short) (narrow) %v2101_v13, 16 }
 0x5c5   :  { %v1527_v3 = vpop.f32.mrf.mxu1  ;;  %v1574_v17 = vpop.f32.mrf.mxu0 }
 0x5c6   :  { %v2103_v9 = vpack.i.bf16 %v1527_v3, %v1339_v28  ;;  %v2107_v15 = vpack.i.bf16 %v1574_v17, %v1386_v38 }
 0x5c7   :  { %v1978_v8 = vpop.f32.mrf.mxu1  ;;  %v1984_v4 = vpop.f32.mrf.mxu0 }
 0x5c8   :  { %2104 = vxpose.xlu0.b32.cont [4/8] (short) (narrow) %v2103_v9, 16 }
 0x5c9   :  { %v1618_v20 = vpop.f32.mrf.mxu1 }
 0x5ca   :  { %v2109_v29 = vpack.i.bf16 %v1618_v20, %v1430_v32 }
 0x5cb   :  { %v1989_v11 = vpop.f32.mrf.mxu1 }
 0x5cc   :  { %2106 = vxpose.xlu0.b32.cont [5/8] (short) (narrow) %v2105_v12, 16 }
 0x5cd   :  { %v1621_v24 = vpop.f32.mrf.mxu1 }
 0x5ce   :  { %v2111_v18 = vpack.i.bf16 %v1621_v24, %v1433_v50 }
 0x5cf   :  { %v1990_v26 = vpop.f32.mrf.mxu1 }
 0x5d0   :  { %2108 = vxpose.xlu0.b32.cont [6/8] (short) (narrow) %v2107_v15, 16 }
 0x5d4   :  { %2110 = vxpose.xlu0.b32.cont [7/8] (short) (narrow) %v2109_v29, 16 }
 0x5d8   :  { %2112 = vxpose.xlu0.b32.end [8/8] (short) (narrow) %v2111_v18, 16 }
 0x638   :  { %v2113_v31 = vpop.trf.xlu0 }
 0x639   :  { %v2117_v22 = vunpack.i.h.bf16 %v2113_v31  ;;  %v2114_v35 = vunpack.i.l.bf16 %v2113_v31 }
 0x63c   :  { %v2118_v25 = vpop.trf.xlu0 }
 0x63d   :  { %v2122_v37 = vunpack.i.h.bf16 %v2118_v25  ;;  %v2119_v33 = vunpack.i.l.bf16 %v2118_v25 }
 0x63f   :  { %v1689_v59 = vpack.c.bf16 %v2119_v33, %v2114_v35  ;;  %v1690_v40 = vpack.c.bf16 %v2122_v37, %v2117_v22 }
 0x641   :  { %1999 = vmatprep.mubr.msk.bf16.mxu0 %vm117_vm0, %v1689_v59 }
 0x642   :  { %2000 = vmatmul.mubr.msk.bf16.vlgmr.msra.gmra.mxu0 %vm117_vm0, %v1690_v40 }
 0x643   :  { %2274 = shalt.err (!%p2271_p5)
}
 0x644   :  { %1810 = dma.vmem_to_hbm [thread:$0]  %s1805_s16, 2048, %s2674_s5, [#allocation10], %s2313_s23, %s2313_s23, %s2314_s24  }
 0x645   :  { %v1850_v41 = vld [vmem:[%s2672_s3 + $0x3] ss:$0 sm:$0xff]  ;;  %s2322_s22 = smov [#allocation8]  }
 0x646   :  { %s1792_s25 = sshll.u32 %s2322_s22, 4  ;;  %s1793_s25 = int_to_ptr.vmem [resolvable:$true] %s1792_s25 }
 0x647   :  { %s2283_s3 = scalar_lea.vmem %s1793_s25, 512  ;;  %p2288_p7 = scmp.lt.s32.totalorder %s1793_s25, %s1793_s25 }
 0x648   :  { %p2284_p6 = scmp.ne.s32.totalorder %s1793_s25, %s2283_s3  ;;  %p2289_p8 = scmp.lt.s32.totalorder %s2283_s3, %s2283_s3 }
 0x64a   :  { %p2290_p9 = por %p2289_p8, %p2288_p7 }
 0x64c   :  { %p2291_p10 = pnand %p2290_p9, %p2284_p6 }
 0x702   :  { %v2001_v63 = vpop.f32.mrf.mxu0 }
 0x703   :  { %v1777_v43 = vadd.f32 %v2001_v63, %v1850_v41 }
 0x704   :  { %v1768_v44 = vpop.f32.mrf.mxu0 }
 0x705   :  { %1785 = vst.msk [vmem:[#allocation8 + $0x10] sm:$0xff] %vm117_vm0, %v1777_v43  ;;  %v1769_v45 = vadd.f32 %v1850_v41, %v1768_v44 }
 0x706   :  { %v2002_v47 = vpop.f32.mrf.mxu0 }
 0x707   :  { %1783 = vst.msk [vmem:[#allocation8] sm:$0xff] %vm117_vm0, %v1769_v45  ;;  %v1780_v48 = vadd.f32 %v2002_v47, %v1850_v41 }
 0x708   :  { %v1771_v49 = vpop.f32.mrf.mxu0 }
 0x709   :  { %1786 = vst.msk [vmem:[#allocation8 + $0x18] sm:$0xff] %vm117_vm0, %v1780_v48  ;;  %v1772_v51 = vadd.f32 %v1850_v41, %v1771_v49 }
 0x70b   :  { %1784 = vst.msk [vmem:[#allocation8 + $0x8] sm:$0xff] %vm117_vm0, %v1772_v51 }
 0x70c   :  { %2294 = shalt.err (!%p2291_p10)
}
 0x70d   :  { %1798 = dma.vmem_to_hbm [thread:$0]  %s1793_s25, 512, %s2673_s4, [#allocation4], %s2313_s23, %s2313_s23, %s2314_s24  }
 0x70e   :  { %2307 = dma.done.wait [#allocation4], 512  }
 0x70f   :  { %2308 = vsyncadd [#allocation4], 4294966784 }
 0x710   :  { %2309 = dma.done.wait [#allocation10], 2048  }
 0x711   :  { %2310 = vsyncadd [#allocation10], 4294965248 }
 0x712   :  { %1817 = vsyncpa [#allocation3], 1 }
 0x713   :  { %1818 = vsyncpa [#allocation6], 1 }
 0x714   :  { %1819 = vsyncpa [#allocation4], 1 }
 0x715   :  { %1820 = vsyncpa [#allocation10], 1 }

</bundles_post_ra>
